<compile_context>
chip_gen: v6e
topology: v6e:2x2x1
jax: 0.10.0
libtpu: 0.0.40
codegen_flags: <defaults>
</compile_context>

<pallas_src>
import numpy as np

import jax
import jax.numpy as jnp
from jax.experimental import pallas as pl
from jax.experimental.pallas import tpu as pltpu

# ---------------------------------------------------------------------------
# Model hyper-parameters (small, consistent with the module's constructor)
# ---------------------------------------------------------------------------
BATCH = 8
INPUT_DIM = 32
LATENT_DIM = 8
ENCODER_LAYERS = [32, 2 * LATENT_DIM]          # last encoder dim = 2 * latent_dim
DECODER_LAYERS = [16, INPUT_DIM]               # hidden -> reconstruction
CLASSIFIER_LAYERS = [16, 4]                    # hidden -> per-head logits
NUM_OUTPUTS = 3                                # number of classifier heads
BN_EPS = 1e-5

PAD = 128                                      # lane width of every padded tile
NUM_MATS = 5                                   # merged weight matrices in the slab
BIAS_ROW = PAD - 1                             # biases live in row 127 (lane 127 == 1)

# Lane layout of the single (batch, 128) output tile / intermediate tiles.
REC_OFF = 0
PRED_DIM = NUM_OUTPUTS * CLASSIFIER_LAYERS[-1]          # 12
PRED_OFF = REC_OFF + INPUT_DIM                          # 32
MU_OFF = PRED_OFF + PRED_DIM                            # 44
LV_OFF = MU_OFF + LATENT_DIM                            # 52
LV2_OFF = LV_OFF + LATENT_DIM                           # 60  (scratch logvar copy)
EPS_OFF = LV_OFF                                        # eps packed at the logvar lanes
CLS_HID = CLASSIFIER_LAYERS[0]                          # 16
CLS_OUT = CLASSIFIER_LAYERS[-1]                         # 4
CLS_OFF = 64                                            # classifier hiddens at [64,112)


# ---------------------------------------------------------------------------
# Fused forward kernel: encoder -> mu/logvar -> reparam -> decoder -> heads.
# Five (tile,128)x(128,128) bf16 MXU matmuls, one dense 128-lane f32 store.
# ---------------------------------------------------------------------------
def ae_forward_kernel(x_ref, w_ref, out_ref):
    xin = x_ref[...]                                   # (TB,128) f32; x@[0,32), eps@[52,60), 1@127

    def dense(v, i):
        return jnp.dot(v.astype(jnp.bfloat16), w_ref[i],
                       preferred_element_type=jnp.float32)

    # encoder: Linear (+ folded eval-mode BN) + ReLU; Dropout = identity (eval).
    # Lane 127 stays 1.0 through each layer (identity entry), carrying the bias row.
    h1 = jnp.maximum(dense(xin, 0), 0.0)               # valid lanes [0,32)
    h = jnp.maximum(dense(h1, 1), 0.0)                 # valid lanes [0,16)

    # mu@[44,52), logvar@[52,60), plus a second logvar copy@[60,68) (free columns).
    lat = dense(h, 2)

    # reparameterize ('normal') with zero lane shuffles:
    #   eps (lanes [52,60) of xin) * exp(0.5*logvar) lands at the logvar lanes;
    #   weight matrix 3 reads mu lanes with +W, noise lanes with +W and the
    #   logvar-copy lanes with -W, so it sees exactly (mu + eps*std) @ W.
    z = lat + xin * jnp.exp(0.5 * lat)

    # decoder hidden @[0,16) and all 3 classifier hiddens @[64,112), fused, ReLU.
    dc = jnp.maximum(dense(z, 3), 0.0)

    # recon @[0,32) (sigmoid) and fused 3-head logits @[32,44); mu/logvar are
    # re-emitted simply by adding `lat` (already at their output lanes).
    o = dense(dc, 4)
    lane = jax.lax.broadcasted_iota(jnp.int32, o.shape, dimension=1)
    out_ref[...] = jnp.where(lane < INPUT_DIM, jax.nn.sigmoid(o), o) + lat


# ---------------------------------------------------------------------------
# Wrapper: batch-tiled grid, 2 input refs, 1 lane-dense output ref.
# ---------------------------------------------------------------------------
def _round_up(n, m):
    return (n + m - 1) // m * m


def _choose_tiling(b_in):
    bp8 = _round_up(max(b_in, 1), 8)
    if bp8 <= 64:
        return bp8, bp8                       # tiny batch: single grid step
    # >=2 steps so ("parallel",) shards across both TensorCores on v7x;
    # tiles capped ~1024 rows and sized adaptively to avoid padded garbage rows.
    steps = max(2, -(-bp8 // 1024))
    tb = _round_up(-(-bp8 // steps), 8)
    return steps * tb, tb


def autoencoder_classifier_forward(x, eps, wslab):
    b_in = x.shape[0]
    bp, tb = _choose_tiling(b_in)

    # ONE fused activation buffer: [ x | 0 | eps | 0 | 1 ] along lanes.
    xin = jnp.concatenate(
        [
            x.astype(jnp.float32),                                       # [0,32)
            jnp.zeros((b_in, EPS_OFF - INPUT_DIM), jnp.float32),         # [32,52)
            eps.astype(jnp.float32),                                     # [52,60)
            jnp.zeros((b_in, BIAS_ROW - (EPS_OFF + LATENT_DIM)), jnp.float32),
            jnp.ones((b_in, 1), jnp.float32),                            # lane 127 = 1 (bias)
        ],
        axis=1,
    )
    if bp > b_in:
        xin = jnp.pad(xin, ((0, bp - b_in), (0, 0)))

    cost = pl.CostEstimate(
        flops=2 * bp * PAD * PAD * NUM_MATS,
        transcendentals=2 * bp * PAD,
        bytes_accessed=2 * 4 * bp * PAD + 2 * NUM_MATS * PAD * PAD,
    )

    out = pl.pallas_call(
        ae_forward_kernel,
        grid=(bp // tb,),
        in_specs=[
            pl.BlockSpec((tb, PAD), lambda i: (i, 0)),                 # fused x/eps/bias tile
            pl.BlockSpec((NUM_MATS, PAD, PAD), lambda i: (0, 0, 0)),   # bf16 weight slab
        ],
        out_specs=pl.BlockSpec((tb, PAD), lambda i: (i, 0)),
        out_shape=jax.ShapeDtypeStruct((bp, PAD), jnp.float32),
        compiler_params=pltpu.CompilerParams(dimension_semantics=("parallel",)),
        cost_estimate=cost,
    )(xin, wslab)

    recon = out[:b_in, REC_OFF:REC_OFF + INPUT_DIM]
    pred = out[:b_in, PRED_OFF:PRED_OFF + PRED_DIM]
    mu = out[:b_in, MU_OFF:MU_OFF + LATENT_DIM]
    logvar = out[:b_in, LV_OFF:LV_OFF + LATENT_DIM]
    return recon, pred, mu, logvar


# ---------------------------------------------------------------------------
# Deterministic synthetic parameters in the PyTorch (unfused) layout.
# ---------------------------------------------------------------------------
def init_raw_params(key):
    keys = iter(jax.random.split(key, 64))

    def lin(in_d, out_d):
        w = jax.random.normal(next(keys), (in_d, out_d), jnp.float32) * 0.1
        b = jax.random.normal(next(keys), (out_d,), jnp.float32) * 0.01
        return w, b

    def bn(dim):
        gamma = 1.0 + 0.1 * jax.random.normal(next(keys), (dim,), jnp.float32)
        beta = 0.1 * jax.random.normal(next(keys), (dim,), jnp.float32)
        mean = 0.1 * jax.random.normal(next(keys), (dim,), jnp.float32)
        var = jax.random.uniform(next(keys), (dim,), jnp.float32, minval=0.5, maxval=1.5)
        return gamma, beta, mean, var

    raw = {}
    enc = []
    in_d = INPUT_DIM
    for dim in ENCODER_LAYERS:
        w, b = lin(in_d, dim)
        enc.append((w, b) + bn(dim))
        in_d = dim
    raw["enc"] = enc
    raw["mu"] = lin(LATENT_DIM, LATENT_DIM)
    raw["logvar"] = lin(LATENT_DIM, LATENT_DIM)
    raw["dec"] = [lin(LATENT_DIM, DECODER_LAYERS[0]),
                  lin(DECODER_LAYERS[0], DECODER_LAYERS[1])]
    raw["cls"] = [(lin(LATENT_DIM, CLASSIFIER_LAYERS[0]),
                   lin(CLASSIFIER_LAYERS[0], CLASSIFIER_LAYERS[1]))
                  for _ in range(NUM_OUTPUTS)]
    return raw


# ---------------------------------------------------------------------------
# Host-side packing: fold BN, fold biases into row 127, merge heads & layers
# into 5 padded (128,128) matrices, cast to bf16.
# ---------------------------------------------------------------------------
def pack_params(raw):
    wslab = np.zeros((NUM_MATS, PAD, PAD), np.float32)

    def put_w(idx, w, row0, col0, scale=1.0):
        w = np.asarray(w, np.float32)
        k, n = w.shape
        wslab[idx, row0:row0 + k, col0:col0 + n] += scale * w

    def put_b(idx, b, col0):
        b = np.asarray(b, np.float32)
        wslab[idx, BIAS_ROW, col0:col0 + b.shape[0]] += b

    def fold_bn(w, b, gamma, beta, mean, var):
        # eval-mode BN folded into the Linear: y = (xW+b)*scale + shift
        scale = np.asarray(gamma, np.float32) / np.sqrt(np.asarray(var, np.float32) + BN_EPS)
        w2 = np.asarray(w, np.float32) * scale[None, :]
        b2 = np.asarray(b, np.float32) * scale + (np.asarray(beta, np.float32)
                                                  - np.asarray(mean, np.float32) * scale)
        return w2, b2

    # mat 0/1: encoder Linears with folded eval-mode BN; identity keeps lane127=1.
    for idx in range(2):
        w, b = fold_bn(*raw["enc"][idx])
        put_w(idx, w, 0, 0)
        put_b(idx, b, 0)
        wslab[idx, BIAS_ROW, BIAS_ROW] = 1.0

    # mat 2: mu reads h[:, :8] (rows [0,8)), logvar reads h[:, 8:16) (rows [8,16));
    # mu/logvar land directly at their OUTPUT lanes, plus a logvar copy at [60,68).
    muw, mub = raw["mu"]
    lvw, lvb = raw["logvar"]
    put_w(2, muw, 0, MU_OFF);            put_b(2, mub, MU_OFF)
    put_w(2, lvw, LATENT_DIM, LV_OFF);   put_b(2, lvb, LV_OFF)
    put_w(2, lvw, LATENT_DIM, LV2_OFF);  put_b(2, lvb, LV2_OFF)

    # mat 3: z-tile -> [decoder hidden | 3 classifier hiddens].
    # Rows [44,52) (mu) and [52,60) (logvar + eps*std) carry +W; rows [60,68)
    # (logvar copy) carry -W, cancelling the spurious logvar term exactly.
    (dw0, db0), (dw1, db1) = raw["dec"]
    for row0, sc in ((MU_OFF, 1.0), (LV_OFF, 1.0), (LV2_OFF, -1.0)):
        put_w(3, dw0, row0, 0, sc)
        for i, ((w1, _), _) in enumerate(raw["cls"]):
            put_w(3, w1, row0, CLS_OFF + i * CLS_HID, sc)
    put_b(3, db0, 0)
    for i, ((_, b1), _) in enumerate(raw["cls"]):
        put_b(3, b1, CLS_OFF + i * CLS_HID)
    wslab[3, BIAS_ROW, BIAS_ROW] = 1.0

    # mat 4: [dec hidden | cls hiddens] -> [recon @[0,32) | pred @[32,44)].
    put_w(4, dw1, 0, REC_OFF)
    put_b(4, db1, REC_OFF)
    for i, (_, (w2, b2)) in enumerate(raw["cls"]):
        put_w(4, w2, CLS_OFF + i * CLS_HID, PRED_OFF + i * CLS_OUT)
        put_b(4, b2, PRED_OFF + i * CLS_OUT)

    return jnp.asarray(wslab, jnp.bfloat16)            # bf16: halves weight DMA, native MXU


# ---------------------------------------------------------------------------
# Pure-JAX f32 reference of the ORIGINAL (unfused) forward, for correctness.
# ---------------------------------------------------------------------------
def reference_forward(x, eps, raw):
    def bn_eval(h, gamma, beta, mean, var):
        return (h - mean) / jnp.sqrt(var + BN_EPS) * gamma + beta

    h = x
    for (w, b, gamma, beta, mean, var) in raw["enc"]:
        h = jnp.maximum(bn_eval(h @ w + b, gamma, beta, mean, var), 0.0)
    half = h.shape[1] // 2
    muw, mub = raw["mu"]
    lvw, lvb = raw["logvar"]
    mu = h[:, :half] @ muw + mub
    logvar = h[:, half:] @ lvw + lvb
    z = mu + eps * jnp.exp(0.5 * logvar)
    (dw0, db0), (dw1, db1) = raw["dec"]
    d = jnp.maximum(z @ dw0 + db0, 0.0)
    recon = jax.nn.sigmoid(d @ dw1 + db1)
    preds = []
    for (w1, b1), (w2, b2) in raw["cls"]:
        c = jnp.maximum(z @ w1 + b1, 0.0)
        preds.append(c @ w2 + b2)
    pred = jnp.concatenate(preds, axis=1)
    return recon, pred, mu, logvar


if __name__ == "__main__":
    key = jax.random.PRNGKey(0)
    k_x, k_eps, k_p = jax.random.split(key, 3)

    x = jax.random.normal(k_x, (BATCH, INPUT_DIM), jnp.float32)
    # reparameterization noise drawn host-side so the forward is deterministic
    eps = jax.random.normal(k_eps, (BATCH, LATENT_DIM), jnp.float32)

    raw = init_raw_params(k_p)
    wslab = pack_params(raw)

    recon, pred, mu, logvar = autoencoder_classifier_forward(x, eps, wslab)
    jax.block_until_ready((recon, pred, mu, logvar))

    refs = reference_forward(x, eps, raw)
    # bf16 weights/activations on the MXU (f32 accumulation) -> relaxed tolerance
    # vs. the pure-f32 reference; observed errors are ~1e-3, well inside 2e-2.
    for got, ref, name in zip((recon, pred, mu, logvar), refs,
                              ("recon", "pred", "mu", "logvar")):
        assert jnp.allclose(got, ref, rtol=2e-2, atol=2e-2), f"{name} mismatch"

    print("KERNEL_OK")
</pallas_src>

<mosaic_0001>
module attributes {stable_mosaic.version = 11 : i64} {
  func.func @ae_forward_kernel(%arg0: i32, %arg1: memref<8x128xf32, #tpu.memory_space<vmem>>, %arg2: memref<5x128x128xbf16, #tpu.memory_space<vmem>>, %arg3: memref<8x128xf32, #tpu.memory_space<vmem>>) attributes {dimension_semantics = [#tpu.dimension_semantics<parallel>], iteration_bounds = array<i64: 1>, scalar_prefetch = 0 : i64, scratch_operands = 0 : i64, tpu.core_type = #tpu.core_type<tc>, window_params = [{transform_indices = @transform_0, window_bounds = array<i64: 8, 128>}, {pipeline_mode = #tpu.pipeline_mode<synchronous>, transform_indices = @transform_1, window_bounds = array<i64: 5, 128, 128>}, {transform_indices = @transform_2, window_bounds = array<i64: 8, 128>}]} {
    %c0 = arith.constant 0 : index
    %c0_0 = arith.constant 0 : index
    %0 = vector.load %arg1[%c0, %c0_0] : memref<8x128xf32, #tpu.memory_space<vmem>>, vector<8x128xf32>
    %1 = arith.truncf %0 : vector<8x128xf32> to vector<8x128xbf16>
    %c0_1 = arith.constant 0 : index
    %c0_2 = arith.constant 0 : index
    %c0_3 = arith.constant 0 : index
    %2 = vector.load %arg2[%c0_1, %c0_2, %c0_3] : memref<5x128x128xbf16, #tpu.memory_space<vmem>>, vector<1x128x128xbf16>
    %3 = vector.shape_cast %2 : vector<1x128x128xbf16> to vector<128x128xbf16>
    %cst = arith.constant dense<0.000000e+00> : vector<8x128xf32>
    %4 = tpu.matmul %1, %3, %cst {dimension_numbers = #tpu.dot_dimension_numbers<[1], [0], [0], [1], [0, 0, 1, 1], [], []>} : vector<8x128xbf16>, vector<128x128xbf16>, vector<8x128xf32> -> vector<8x128xf32>
    %cst_4 = arith.constant 0.000000e+00 : f32
    %5 = vector.broadcast %cst_4 : f32 to vector<8x128xf32>
    %6 = arith.maximumf %4, %5 : vector<8x128xf32>
    %7 = arith.truncf %6 : vector<8x128xf32> to vector<8x128xbf16>
    %c1 = arith.constant 1 : index
    %c0_5 = arith.constant 0 : index
    %c0_6 = arith.constant 0 : index
    %8 = vector.load %arg2[%c1, %c0_5, %c0_6] : memref<5x128x128xbf16, #tpu.memory_space<vmem>>, vector<1x128x128xbf16>
    %9 = vector.shape_cast %8 : vector<1x128x128xbf16> to vector<128x128xbf16>
    %cst_7 = arith.constant dense<0.000000e+00> : vector<8x128xf32>
    %10 = tpu.matmul %7, %9, %cst_7 {dimension_numbers = #tpu.dot_dimension_numbers<[1], [0], [0], [1], [0, 0, 1, 1], [], []>} : vector<8x128xbf16>, vector<128x128xbf16>, vector<8x128xf32> -> vector<8x128xf32>
    %cst_8 = arith.constant 0.000000e+00 : f32
    %11 = vector.broadcast %cst_8 : f32 to vector<8x128xf32>
    %12 = arith.maximumf %10, %11 : vector<8x128xf32>
    %13 = arith.truncf %12 : vector<8x128xf32> to vector<8x128xbf16>
    %c2 = arith.constant 2 : index
    %c0_9 = arith.constant 0 : index
    %c0_10 = arith.constant 0 : index
    %14 = vector.load %arg2[%c2, %c0_9, %c0_10] : memref<5x128x128xbf16, #tpu.memory_space<vmem>>, vector<1x128x128xbf16>
    %15 = vector.shape_cast %14 : vector<1x128x128xbf16> to vector<128x128xbf16>
    %cst_11 = arith.constant dense<0.000000e+00> : vector<8x128xf32>
    %16 = tpu.matmul %13, %15, %cst_11 {dimension_numbers = #tpu.dot_dimension_numbers<[1], [0], [0], [1], [0, 0, 1, 1], [], []>} : vector<8x128xbf16>, vector<128x128xbf16>, vector<8x128xf32> -> vector<8x128xf32>
    %cst_12 = arith.constant 5.000000e-01 : f32
    %17 = vector.broadcast %cst_12 : f32 to vector<8x128xf32>
    %18 = arith.mulf %17, %16 : vector<8x128xf32>
    %19 = math.exp %18 : vector<8x128xf32>
    %20 = arith.mulf %0, %19 : vector<8x128xf32>
    %21 = arith.addf %16, %20 : vector<8x128xf32>
    %22 = arith.truncf %21 : vector<8x128xf32> to vector<8x128xbf16>
    %c3 = arith.constant 3 : index
    %c0_13 = arith.constant 0 : index
    %c0_14 = arith.constant 0 : index
    %23 = vector.load %arg2[%c3, %c0_13, %c0_14] : memref<5x128x128xbf16, #tpu.memory_space<vmem>>, vector<1x128x128xbf16>
    %24 = vector.shape_cast %23 : vector<1x128x128xbf16> to vector<128x128xbf16>
    %cst_15 = arith.constant dense<0.000000e+00> : vector<8x128xf32>
    %25 = tpu.matmul %22, %24, %cst_15 {dimension_numbers = #tpu.dot_dimension_numbers<[1], [0], [0], [1], [0, 0, 1, 1], [], []>} : vector<8x128xbf16>, vector<128x128xbf16>, vector<8x128xf32> -> vector<8x128xf32>
    %cst_16 = arith.constant 0.000000e+00 : f32
    %26 = vector.broadcast %cst_16 : f32 to vector<8x128xf32>
    %27 = arith.maximumf %25, %26 : vector<8x128xf32>
    %28 = arith.truncf %27 : vector<8x128xf32> to vector<8x128xbf16>
    %c4 = arith.constant 4 : index
    %c0_17 = arith.constant 0 : index
    %c0_18 = arith.constant 0 : index
    %29 = vector.load %arg2[%c4, %c0_17, %c0_18] : memref<5x128x128xbf16, #tpu.memory_space<vmem>>, vector<1x128x128xbf16>
    %30 = vector.shape_cast %29 : vector<1x128x128xbf16> to vector<128x128xbf16>
    %cst_19 = arith.constant dense<0.000000e+00> : vector<8x128xf32>
    %31 = tpu.matmul %28, %30, %cst_19 {dimension_numbers = #tpu.dot_dimension_numbers<[1], [0], [0], [1], [0, 0, 1, 1], [], []>} : vector<8x128xbf16>, vector<128x128xbf16>, vector<8x128xf32> -> vector<8x128xf32>
    %32 = tpu.iota {dimensions = array<i32: 1>} : vector<8x128xi32>
    %c32_i32 = arith.constant 32 : i32
    %33 = vector.broadcast %c32_i32 : i32 to vector<8x128xi32>
    %34 = arith.cmpi slt, %32, %33 : vector<8x128xi32>
    %35 = arith.negf %31 : vector<8x128xf32>
    %36 = math.exp %35 : vector<8x128xf32>
    %cst_20 = arith.constant 1.000000e+00 : f32
    %37 = vector.broadcast %cst_20 : f32 to vector<8x128xf32>
    %38 = arith.addf %37, %36 : vector<8x128xf32>
    %39 = arith.divf %37, %38 : vector<8x128xf32>
    %40 = arith.select %34, %39, %31 : vector<8x128xi1>, vector<8x128xf32>
    %41 = arith.addf %40, %16 : vector<8x128xf32>
    %c0_21 = arith.constant 0 : index
    %c0_22 = arith.constant 0 : index
    %42 = vector.load %arg3[%c0_21, %c0_22] : memref<8x128xf32, #tpu.memory_space<vmem>>, vector<8x128xf32>
    tpu.vector_store %arg3[%c0_21, %c0_22], %41 {strides = array<i32>} : memref<8x128xf32, #tpu.memory_space<vmem>>, vector<8x128xf32>,
    return
  }
  func.func @transform_0(%arg0: i32) -> (i32, i32) {
    %c0_i32 = arith.constant 0 : i32
    %c0_i32_0 = arith.constant 0 : i32
    return %arg0, %c0_i32 : i32, i32
  }
  func.func @transform_1(%arg0: i32) -> (i32, i32, i32) {
    %c0_i32 = arith.constant 0 : i32
    %c0_i32_0 = arith.constant 0 : i32
    %c0_i32_1 = arith.constant 0 : i32
    %c0_i32_2 = arith.constant 0 : i32
    return %c0_i32, %c0_i32_0, %c0_i32_1 : i32, i32, i32
  }
  func.func @transform_2(%arg0: i32) -> (i32, i32) {
    %c0_i32 = arith.constant 0 : i32
    %c0_i32_0 = arith.constant 0 : i32
    return %arg0, %c0_i32 : i32, i32
  }
}

</mosaic_0001>

<bundles_post_ra>
// kernel: tpu_custom_call.1
= control target key start
LH: loop header
LB: loop body
LE: loop exit
PB: predicated region body
PF: predicated region fallthrough
CT: control target
= control target key end

     0   :  { %7 = vsyncpa [#allocation3], 0  ;;  %s996_s0 = inlined_call_operand.hbm [shape: f32[8,128], index: 0, kind: input, shape index: {}]   ;;  %s997_s1 = inlined_call_operand.hbm [shape: bf16[5,128,128], index: 1, kind: input, shape index: {}]   ;;  %s998_s2 = inlined_call_operand.hbm [shape: f32[8,128], index: 2, kind: output, shape index: {}]  }
   0x1   :  { %8 = vsyncpa [#allocation6], 0 }
   0x2   :  { %9 = vsyncpa [#allocation4], 0  ;;  %s910_s9 = smov [#allocation2]   ;;  %s911_s11 = smov [#allocation5]  }
   0x3   :  { %s16_s10 = sshll.u32 %s910_s9, 4  ;;  %s25_s12 = sshll.u32 %s911_s11, 4  ;;  %s17_s10 = int_to_ptr.vmem [resolvable:$true] %s16_s10  ;;  %s26_s12 = int_to_ptr.vmem [resolvable:$true] %s25_s12 }
   0x4   :  { %s852_s13 = scalar_lea.vmem %s17_s10, 128  ;;  %p857_p1 = scmp.lt.s32.totalorder %s17_s10, %s17_s10 }
   0x5   :  { %p853_p0 = scmp.ne.s32.totalorder %s17_s10, %s852_s13  ;;  %p858_p2 = scmp.lt.s32.totalorder %s852_s13, %s852_s13 }
   0x7   :  { %p859_p3 = por %p858_p2, %p857_p1 }
   0x9   :  { %p860_p4 = pnand %p859_p3, %p853_p0 }
   0xb   :  { %863 = shalt.err (!%p860_p4)
}
   0xc   :  { %19 = dma.hbm_to_vmem [thread:$0]  %s996_s0, 128, %s17_s10, [#allocation3]  }
   0xd   :  { %s872_s16 = scalar_lea.vmem %s26_s12, 5120  ;;  %p877_p6 = scmp.lt.s32.totalorder %s26_s12, %s26_s12 }
   0xe   :  { %p873_p5 = scmp.ne.s32.totalorder %s26_s12, %s872_s16  ;;  %p878_p7 = scmp.lt.s32.totalorder %s872_s16, %s872_s16 }
  0x10   :  { %p879_p8 = por %p878_p7, %p877_p6 }
  0x12   :  { %p880_p9 = pnand %p879_p8, %p873_p5 }
  0x14   :  { %883 = shalt.err (!%p880_p9)
}
  0x15   :  { %s912_s17 = smov 64   ;;  %s913_s18 = smov 4  }
  0x16   :  { %31 = dma.hbm_to_vmem [thread:$0]  %s997_s1, 5120, %s26_s12, [#allocation6], %s912_s17, %s912_s17, %s913_s18  }
  0x17   :  { %904 = dma.done.wait [#allocation3], 128  }
  0x18   :  { %905 = vsyncadd [#allocation3], 4294967168 }
  0x19   :  { %906 = dma.done.wait [#allocation6], 5120  }
  0x1a   :  { %907 = vsyncadd [#allocation6], 4294962176  ;;  %v914_v0 = vmov 0.0   ;;  %vm915_vm0 = vmmov 0   ;;  %v798_v1 = vld [vmem:[#allocation5 + $0x38] sm:$0xff]   ;;  %v799_v2 = vld [vmem:[#allocation5 + $0x30] sm:$0xff]  }
  0x1b   :  { %691 = vmatprep.subr.bf16.mxu0 %v914_v0  ;;  %707 = vmatprep.mubr.msk.bf16.mxu0 %vm915_vm0, %v914_v0  ;;  %v800_v3 = vld [vmem:[#allocation5 + $0x28] sm:$0xff]   ;;  %v806_v4 = vld [vmem:[#allocation5 + $0x78] sm:$0xff]   ;;  %v801_v5 = vld [vmem:[#allocation5 + $0x20] sm:$0xff]   ;;  %s916_s0 = smov [#allocation7]  }
  0x1c   :  { %711 = vmatprep.subr.bf16.mxu1 %v914_v0  ;;  %727 = vmatprep.mubr.msk.bf16.mxu1 %vm915_vm0, %v914_v0  ;;  %v807_v6 = vld [vmem:[#allocation5 + $0x70] sm:$0xff]   ;;  %v802_v7 = vld [vmem:[#allocation5 + $0x18] sm:$0xff]   ;;  %v808_v8 = vld [vmem:[#allocation5 + $0x68] sm:$0xff]   ;;  %s595_s1 = sshll.u32 %s916_s0, 4  ;;  %s596_s1 = int_to_ptr.vmem [resolvable:$true] %s595_s1 }
  0x1d   :  { %692 = vmatpush3.bf16.msra.mxu0 %v798_v1  ;;  %712 = vmatpush3.bf16.msra.mxu1 %v806_v4  ;;  %v803_v9 = vld [vmem:[#allocation5 + $0x10] sm:$0xff]   ;;  %v809_v10 = vld [vmem:[#allocation5 + $0x60] sm:$0xff]   ;;  %v804_v11 = vld [vmem:[#allocation5 + $0x8] sm:$0xff]   ;;  %s884_s21 = scalar_lea.vmem %s596_s1, 128  ;;  %p889_p11 = scmp.lt.s32.totalorder %s596_s1, %s596_s1 }
  0x1e   :  { %693 = vmatprep.subr.bf16.mxu0 %v914_v0  ;;  %713 = vmatprep.subr.bf16.mxu1 %v914_v0  ;;  %v810_v12 = vld [vmem:[#allocation5 + $0x58] sm:$0xff]   ;;  %v805_v13 = vld [vmem:[#allocation5] sm:$0xff]   ;;  %v811_v15 = vld [vmem:[#allocation5 + $0x50] sm:$0xff]   ;;  %p885_p10 = scmp.ne.s32.totalorder %s596_s1, %s884_s21  ;;  %p890_p12 = scmp.lt.s32.totalorder %s884_s21, %s884_s21 }
  0x1f   :  { %v953_v14 = vld [vmem:[#allocation2] sm:$0xff]  ;;  %v812_v17 = vld [vmem:[#allocation5 + $0x48] sm:$0xff]   ;;  %v813_v18 = vld [vmem:[#allocation5 + $0x40] sm:$0xff]  }
  0x20   :  { %v40_v16 = vpack.c.bf16 %v953_v14, %v953_v14  ;;  %v814_v19 = vld [vmem:[#allocation5 + $0xb8] sm:$0xff]   ;;  %v815_v20 = vld [vmem:[#allocation5 + $0xb0] sm:$0xff]   ;;  %v816_v21 = vld [vmem:[#allocation5 + $0xa8] sm:$0xff]   ;;  %p891_p13 = por %p890_p12, %p889_p11 }
  0x21   :  { %694 = vmatpush3.bf16.msra.mxu0 %v799_v2  ;;  %714 = vmatpush3.bf16.msra.mxu1 %v807_v6  ;;  %v817_v22 = vld [vmem:[#allocation5 + $0xa0] sm:$0xff]   ;;  %v818_v23 = vld [vmem:[#allocation5 + $0x98] sm:$0xff]   ;;  %v819_v24 = vld [vmem:[#allocation5 + $0x90] sm:$0xff]  }
  0x22   :  { %695 = vmatprep.subr.bf16.mxu0 %v914_v0  ;;  %715 = vmatprep.subr.bf16.mxu1 %v914_v0  ;;  %v820_v25 = vld [vmem:[#allocation5 + $0x88] sm:$0xff]   ;;  %v821_v32 = vld [vmem:[#allocation5 + $0x80] sm:$0xff]   ;;  %v822_v33 = vld [vmem:[#allocation5 + $0xf8] sm:$0xff]   ;;  %p892_p0 = pnand %p891_p13, %p885_p10 }
  0x23   :  { %v823_v34 = vld [vmem:[#allocation5 + $0xf0] sm:$0xff]   ;;  %v824_v41 = vld [vmem:[#allocation5 + $0xe8] sm:$0xff]   ;;  %v825_v42 = vld [vmem:[#allocation5 + $0xe0] sm:$0xff]  }
  0x24   :  { %v826_v43 = vld [vmem:[#allocation5 + $0xd8] sm:$0xff]   ;;  %v827_v44 = vld [vmem:[#allocation5 + $0xd0] sm:$0xff]   ;;  %v828_v45 = vld [vmem:[#allocation5 + $0xc8] sm:$0xff]  }
  0x25   :  { %696 = vmatpush3.bf16.msra.mxu0 %v800_v3  ;;  %716 = vmatpush3.bf16.msra.mxu1 %v808_v8  ;;  %v829_v46 = vld [vmem:[#allocation5 + $0xc0] sm:$0xff]   ;;  %v830_v47 = vld [vmem:[#allocation5 + $0x138] sm:$0xff]   ;;  %v831_v48 = vld [vmem:[#allocation5 + $0x130] sm:$0xff]  }
  0x26   :  { %697 = vmatprep.subr.bf16.mxu0 %v914_v0  ;;  %717 = vmatprep.subr.bf16.mxu1 %v914_v0  ;;  %v832_v49 = vld [vmem:[#allocation5 + $0x128] sm:$0xff]   ;;  %v833_v50 = vld [vmem:[#allocation5 + $0x120] sm:$0xff]   ;;  %v834_v51 = vld [vmem:[#allocation5 + $0x118] sm:$0xff]  }
  0x27   :  { %v835_v52 = vld [vmem:[#allocation5 + $0x110] sm:$0xff]   ;;  %v836_v53 = vld [vmem:[#allocation5 + $0x108] sm:$0xff]   ;;  %v837_v1 = vld [vmem:[#allocation5 + $0x100] sm:$0xff]  }
  0x29   :  { %698 = vmatpush3.bf16.msra.mxu0 %v801_v5  ;;  %718 = vmatpush3.bf16.msra.mxu1 %v809_v10 }
  0x2a   :  { %699 = vmatprep.subr.bf16.mxu0 %v914_v0  ;;  %719 = vmatprep.subr.bf16.mxu1 %v914_v0 }
  0x2d   :  { %700 = vmatpush3.bf16.msra.mxu0 %v802_v7  ;;  %720 = vmatpush3.bf16.msra.mxu1 %v810_v12 }
  0x2e   :  { %701 = vmatprep.subr.bf16.mxu0 %v914_v0  ;;  %721 = vmatprep.subr.bf16.mxu1 %v914_v0 }
  0x31   :  { %702 = vmatpush3.bf16.msra.mxu0 %v803_v9  ;;  %722 = vmatpush3.bf16.msra.mxu1 %v811_v15 }
  0x32   :  { %703 = vmatprep.subr.bf16.mxu0 %v914_v0  ;;  %723 = vmatprep.subr.bf16.mxu1 %v914_v0 }
  0x35   :  { %704 = vmatpush3.bf16.msra.mxu0 %v804_v11  ;;  %724 = vmatpush3.bf16.msra.mxu1 %v812_v17 }
  0x36   :  { %705 = vmatprep.subr.bf16.mxu0 %v914_v0  ;;  %725 = vmatprep.subr.bf16.mxu1 %v914_v0 }
  0x39   :  { %706 = vmatpush3.bf16.msra.mxu0 %v805_v13  ;;  %726 = vmatpush3.bf16.msra.mxu1 %v813_v18 }
  0x3a   :  { %731 = vmatprep.subr.bf16.mxu0 %v914_v0  ;;  %751 = vmatprep.subr.bf16.mxu1 %v914_v0 }
  0x3c   :  { %708 = vmatmul.mubr.bf16.vlgmr.msra.gmra.mxu0 %v40_v16 }
  0x3d   :  { %747 = vmatprep.mubr.msk.bf16.mxu0 %vm915_vm0, %v914_v0  ;;  %732 = vmatpush3.bf16.msra.mxu0 %v814_v19 }
  0x3e   :  { %733 = vmatprep.subr.bf16.mxu0 %v914_v0 }
  0x41   :  { %734 = vmatpush3.bf16.msra.mxu0 %v815_v20 }
  0x42   :  { %735 = vmatprep.subr.bf16.mxu0 %v914_v0 }
  0x45   :  { %736 = vmatpush3.bf16.msra.mxu0 %v816_v21 }
  0x46   :  { %737 = vmatprep.subr.bf16.mxu0 %v914_v0 }
  0x49   :  { %738 = vmatpush3.bf16.msra.mxu0 %v817_v22 }
  0x4a   :  { %739 = vmatprep.subr.bf16.mxu0 %v914_v0 }
  0x4d   :  { %740 = vmatpush3.bf16.msra.mxu0 %v818_v23 }
  0x4e   :  { %741 = vmatprep.subr.bf16.mxu0 %v914_v0 }
  0x51   :  { %742 = vmatpush3.bf16.msra.mxu0 %v819_v24 }
  0x52   :  { %743 = vmatprep.subr.bf16.mxu0 %v914_v0 }
  0x55   :  { %744 = vmatpush3.bf16.msra.mxu0 %v820_v25 }
  0x56   :  { %745 = vmatprep.subr.bf16.mxu0 %v914_v0 }
  0x59   :  { %746 = vmatpush3.bf16.msra.mxu0 %v821_v32 }
  0x5a   :  { %771 = vmatprep.subr.bf16.mxu0 %v914_v0 }
  0xfc   :  { %v139_v26 = vpop.f32.mrf.mxu0 }
  0xfd   :  { %v145_v27 = vmax.f32 %v139_v26, 0.0 }
  0xfe   :  { %v709_v28 = vpop.f32.mrf.mxu0 }
  0xff   :  { %v146_v29 = vpack.c.bf16 %v145_v27, %v145_v27 }
 0x100   :  { %v142_v30 = vpop.f32.mrf.mxu0 }
 0x101   :  { %728 = vmatmul.mubr.bf16.vlgmr.msra.gmra.mxu1 %v146_v29 }
 0x102   :  { %v710_v31 = vpop.f32.mrf.mxu0  ;;  %767 = vmatprep.mubr.msk.bf16.mxu1 %vm915_vm0, %v914_v0  ;;  %752 = vmatpush3.bf16.msra.mxu1 %v822_v33 }
 0x103   :  { %753 = vmatprep.subr.bf16.mxu1 %v914_v0 }
 0x106   :  { %754 = vmatpush3.bf16.msra.mxu1 %v823_v34 }
 0x107   :  { %755 = vmatprep.subr.bf16.mxu1 %v914_v0 }
 0x10a   :  { %756 = vmatpush3.bf16.msra.mxu1 %v824_v41 }
 0x10b   :  { %757 = vmatprep.subr.bf16.mxu1 %v914_v0 }
 0x10e   :  { %758 = vmatpush3.bf16.msra.mxu1 %v825_v42 }
 0x10f   :  { %759 = vmatprep.subr.bf16.mxu1 %v914_v0 }
 0x112   :  { %760 = vmatpush3.bf16.msra.mxu1 %v826_v43 }
 0x113   :  { %761 = vmatprep.subr.bf16.mxu1 %v914_v0 }
 0x116   :  { %762 = vmatpush3.bf16.msra.mxu1 %v827_v44 }
 0x117   :  { %763 = vmatprep.subr.bf16.mxu1 %v914_v0 }
 0x11a   :  { %764 = vmatpush3.bf16.msra.mxu1 %v828_v45 }
 0x11b   :  { %765 = vmatprep.subr.bf16.mxu1 %v914_v0 }
 0x11e   :  { %766 = vmatpush3.bf16.msra.mxu1 %v829_v46 }
 0x1c1   :  { %v246_v35 = vpop.f32.mrf.mxu1 }
 0x1c2   :  { %v252_v36 = vmax.f32 %v246_v35, 0.0 }
 0x1c3   :  { %v729_v37 = vpop.f32.mrf.mxu1 }
 0x1c4   :  { %v253_v38 = vpack.c.bf16 %v252_v36, %v252_v36 }
 0x1c5   :  { %v249_v39 = vpop.f32.mrf.mxu1 }
 0x1c6   :  { %748 = vmatmul.mubr.bf16.vlgmr.msra.gmra.mxu0 %v253_v38 }
 0x1c7   :  { %v730_v40 = vpop.f32.mrf.mxu1  ;;  %787 = vmatprep.mubr.msk.bf16.mxu0 %vm915_vm0, %v914_v0  ;;  %772 = vmatpush3.bf16.msra.mxu0 %v830_v47 }
 0x1c8   :  { %773 = vmatprep.subr.bf16.mxu0 %v914_v0 }
 0x1cb   :  { %774 = vmatpush3.bf16.msra.mxu0 %v831_v48 }
 0x1cc   :  { %775 = vmatprep.subr.bf16.mxu0 %v914_v0 }
 0x1cf   :  { %776 = vmatpush3.bf16.msra.mxu0 %v832_v49 }
 0x1d0   :  { %777 = vmatprep.subr.bf16.mxu0 %v914_v0 }
 0x1d3   :  { %778 = vmatpush3.bf16.msra.mxu0 %v833_v50 }
 0x1d4   :  { %779 = vmatprep.subr.bf16.mxu0 %v914_v0 }
 0x1d7   :  { %780 = vmatpush3.bf16.msra.mxu0 %v834_v51 }
 0x1d8   :  { %781 = vmatprep.subr.bf16.mxu0 %v914_v0 }
 0x1db   :  { %782 = vmatpush3.bf16.msra.mxu0 %v835_v52 }
 0x1dc   :  { %783 = vmatprep.subr.bf16.mxu0 %v914_v0 }
 0x1df   :  { %784 = vmatpush3.bf16.msra.mxu0 %v836_v53 }
 0x1e0   :  { %785 = vmatprep.subr.bf16.mxu0 %v914_v0 }
 0x1e3   :  { %786 = vmatpush3.bf16.msra.mxu0 %v837_v1 }
 0x286   :  { %v353_v54 = vpop.f32.mrf.mxu0 }
 0x287   :  { %v359_v55 = vmul.f32 0.5, %v353_v54 }
 0x288   :  { %v749_v56 = vpop.f32.mrf.mxu0 }
 0x289   :  { %v360_v57 = vmul.f32 1.442695, %v359_v55 }
 0x28a   :  { %v356_v58 = vpop.f32.mrf.mxu0 }
 0x28b   :  { %838 = vpow2.f32 %v360_v57 }
 0x28c   :  { %v750_v59 = vpop.f32.mrf.mxu0 }
 0x298   :  { %v839_v60 = vpop.eup %838 }
 0x299   :  { %v362_v61 = vmul.f32 %v839_v60, %v953_v14  ;;  %v577_v14 = vlaneseq }
 0x29b   :  { %v363_v62 = vadd.f32 %v362_v61, %v353_v54  ;;  %v578_v15 = vand.u32 127, %v577_v14 }
 0x29d   :  { %v364_v63 = vpack.c.bf16 %v363_v62, %v363_v62  ;;  %vm579_vm1 = vcmp.lt.s32.totalorder %v578_v15, 32 }
 0x29f   :  { %768 = vmatmul.mubr.bf16.vlgmr.msra.gmra.mxu1 %v364_v63 }
 0x35f   :  { %v464_v2 = vpop.f32.mrf.mxu1 }
 0x360   :  { %v470_v3 = vmax.f32 %v464_v2, 0.0 }
 0x361   :  { %v769_v4 = vpop.f32.mrf.mxu1 }
 0x362   :  { %v471_v5 = vpack.c.bf16 %v470_v3, %v470_v3 }
 0x363   :  { %v467_v0 = vpop.f32.mrf.mxu1 }
 0x364   :  { %788 = vmatmul.mubr.bf16.vlgmr.msra.gmra.mxu0 %v471_v5 }
 0x365   :  { %v770_v6 = vpop.f32.mrf.mxu1 }
 0x424   :  { %v571_v7 = vpop.f32.mrf.mxu0 }
 0x425   :  { %v645_v8 = vmul.f32 -1.442695, %v571_v7 }
 0x426   :  { %v789_v9 = vpop.f32.mrf.mxu0 }
 0x427   :  { %840 = vpow2.f32 %v645_v8 }
 0x428   :  { %v574_v10 = vpop.f32.mrf.mxu0 }
 0x42a   :  { %v790_v11 = vpop.f32.mrf.mxu0 }
 0x434   :  { %v841_v12 = vpop.eup %840 }
 0x435   :  { %v583_v13 = vadd.f32 1.0, %v841_v12 }
 0x437   :  { %842 = vrcp.f32 %v583_v13 }
 0x444   :  { %v843_v16 = vpop.eup %842 }
 0x445   :  { %v586_v17 = vsel %vm579_vm1, %v843_v16, %v571_v7 }
 0x446   :  { %v587_v18 = vadd.f32 %v586_v17, %v353_v54 }
 0x448   :  { %588 = vst [vmem:[#allocation7] sm:$0xff] %v587_v18 }
 0x449   :  { %895 = shalt.err (!%p892_p0)
}
 0x44a   :  { %598 = dma.vmem_to_hbm [thread:$0]  %s596_s1, 128, %s998_s2, [#allocation4]  }
 0x44b   :  { %908 = dma.done.wait [#allocation4], 128  }
 0x44c   :  { %909 = vsyncadd [#allocation4], 4294967168 }
 0x44d   :  { %602 = vsyncpa [#allocation3], 1 }
 0x44e   :  { %603 = vsyncpa [#allocation6], 1 }
 0x44f   :  { %604 = vsyncpa [#allocation4], 1 }

</bundles_post_ra>
